<compile_context>
chip_gen: v7x
topology: tpu7x:2x2x1
jax: 0.10.0
libtpu: 0.0.40
codegen_flags: <defaults>
</compile_context>

<pallas_src>
import functools

import jax
import jax.numpy as jnp
from jax import lax
from jax.experimental import pallas as pl
from jax.experimental.pallas import tpu as pltpu

HIDDEN = 256
LANE = 128
SUBLANE = 8
MAX_BATCH_TILE = 2048     # rows per grid step (fits comfortably under scoped VMEM)
MAX_CHUNK = 512           # rows per in-kernel MXU pass


def _round_up(x: int, m: int) -> int:
    return ((x + m - 1) // m) * m


def _pick_tiles(batch: int):
    """Pick (tile rows, padded batch, grid steps).

    * steps >= cdiv(batch, MAX_BATCH_TILE) so every tile fits VMEM.
    * steps >= 2 whenever each step still gets a full sublane of real rows, so the
      'parallel' batch axis can shard across v7x's two TensorCores.
    * tb is balanced across steps (sublane-rounded), capping batch padding at 7 rows/step.
    """
    steps = max(1, pl.cdiv(batch, MAX_BATCH_TILE))
    if steps < 2 and batch >= 2 * SUBLANE:
        steps = 2
    tb = _round_up(pl.cdiv(batch, steps), SUBLANE)
    return tb, tb * steps, steps


def _pick_chunk(tb: int) -> int:
    """Largest sublane-aligned divisor of tb that is <= MAX_CHUNK (== tb if tb <= 512)."""
    chunk = SUBLANE
    for c in range(SUBLANE, min(tb, MAX_CHUNK) + 1, SUBLANE):
        if tb % c == 0:
            chunk = c
    return chunk


def hex_policy_kernel(x_ref, w1_ref, b1_ref, w2_ref, b2_ref, w3_ref, b3_ref,
                      o_ref, *, chunk):
    """One batch tile of the 3-layer MLP, processed in `chunk`-row sub-tiles.

    bf16 matmuls with f32 MXU accumulation; bias add + ReLU stay in f32 (cheap VPU
    filler under MXU slack). Sub-tiling keeps the MXU fed on v5e/v6e and keeps the
    f32 h1/h2 temporaries small in VMEM.
    """
    nchunks = x_ref.shape[0] // chunk

    def body(c, carry):
        r = pl.multiple_of(c * chunk, chunk)
        xb = x_ref[pl.ds(r, chunk), :].astype(jnp.bfloat16)      # in-kernel cast
        # fc1 + relu (K = board_dim, un-padded)
        h1 = jnp.dot(xb, w1_ref[...], preferred_element_type=jnp.float32)
        h1 = jnp.maximum(h1 + b1_ref[...], 0.0)
        # fc2 + relu
        h2 = jnp.dot(h1.astype(jnp.bfloat16), w2_ref[...],
                     preferred_element_type=jnp.float32)
        h2 = jnp.maximum(h2 + b2_ref[...], 0.0)
        # fc3 (logits) -- lane-dense 128-wide store
        o = jnp.dot(h2.astype(jnp.bfloat16), w3_ref[...],
                    preferred_element_type=jnp.float32)
        o_ref[pl.ds(r, chunk), :] = o + b3_ref[...]
        return carry

    lax.fori_loop(0, nchunks, body, 0, unroll=True)


@functools.partial(jax.jit, static_argnames=("return_padded",))
def hex_policy_forward(x, params, return_padded=False):
    """x: (batch, board_dim) f32 -> logits.

    return_padded=False: (batch, board_dim) f32  (drop-in HexPolicyNet semantics).
    return_padded=True : (padded_batch, out_pad) f32 padded buffer (padded logit
                         columns are exactly 0) -- lets a fused consumer skip the
                         extra slice pass over the output.
    """
    w1, b1, w2, b2, w3, b3 = params
    batch, board_dim = x.shape
    out_pad = w3.shape[1]                  # board_dim rounded up to 128 lanes

    tb, padded_batch, steps = _pick_tiles(batch)
    if padded_batch != batch:
        x = jnp.pad(x, ((0, padded_batch - batch), (0, 0)))
    chunk = _pick_chunk(tb)

    flops = 2 * padded_batch * (board_dim * HIDDEN + HIDDEN * HIDDEN + HIDDEN * out_pad)
    bytes_accessed = (
        padded_batch * board_dim * 4                  # f32 activations in
        + (w1.size + w2.size + w3.size) * 2           # bf16 weights (VMEM-resident)
        + (b1.size + b2.size + b3.size) * 4           # f32 biases
        + padded_batch * out_pad * 4                  # f32 logits out
    )

    out = pl.pallas_call(
        functools.partial(hex_policy_kernel, chunk=chunk),
        out_shape=jax.ShapeDtypeStruct((padded_batch, out_pad), jnp.float32),
        grid=(steps,),
        in_specs=[
            pl.BlockSpec((tb, board_dim), lambda i: (i, 0)),       # x tile (streams)
            # Constant index_maps -> weights/biases DMA'd once, VMEM-resident.
            pl.BlockSpec((board_dim, HIDDEN), lambda i: (0, 0)),   # w1
            pl.BlockSpec((1, HIDDEN), lambda i: (0, 0)),           # b1
            pl.BlockSpec((HIDDEN, HIDDEN), lambda i: (0, 0)),      # w2
            pl.BlockSpec((1, HIDDEN), lambda i: (0, 0)),           # b2
            pl.BlockSpec((HIDDEN, out_pad), lambda i: (0, 0)),     # w3
            pl.BlockSpec((1, out_pad), lambda i: (0, 0)),          # b3
        ],
        out_specs=pl.BlockSpec((tb, out_pad), lambda i: (i, 0)),
        compiler_params=pltpu.CompilerParams(
            dimension_semantics=("parallel",),
        ),
        cost_estimate=pl.CostEstimate(
            flops=flops, transcendentals=0, bytes_accessed=bytes_accessed),
    )(x, w1, b1, w2, b2, w3, b3)

    if return_padded:
        return out
    return out[:batch, :board_dim]


def init_params(board_size: int, key):
    """nn.Linear-style init. Weights pre-transposed as (in, out), bf16; biases f32.
    Only fc3's output side is zero-padded to 128 lanes (padded logit columns are
    exactly 0). Create once and reuse across calls so weights stay device-resident."""
    board_dim = board_size * board_size
    out_pad = _round_up(board_dim, LANE)
    keys = jax.random.split(key, 6)

    def linear(kw, kb, fan_in, fan_out, pad_out=None):
        bound = 1.0 / jnp.sqrt(jnp.float32(fan_in))
        w = jax.random.uniform(kw, (fan_in, fan_out), jnp.float32, -bound, bound)
        b = jax.random.uniform(kb, (1, fan_out), jnp.float32, -bound, bound)
        po = pad_out if pad_out is not None else fan_out
        w_p = jnp.zeros((fan_in, po), jnp.float32).at[:, :fan_out].set(w)
        b_p = jnp.zeros((1, po), jnp.float32).at[:, :fan_out].set(b)
        return w_p.astype(jnp.bfloat16), b_p       # bf16 weights, f32 biases

    w1, b1 = linear(keys[0], keys[1], board_dim, HIDDEN)
    w2, b2 = linear(keys[2], keys[3], HIDDEN, HIDDEN)
    w3, b3 = linear(keys[4], keys[5], HIDDEN, board_dim, pad_out=out_pad)
    return (w1, b1, w2, b2, w3, b3)


def reference_forward(x, params, board_dim):
    """Pure-JAX reference reproducing the kernel math (bf16 inputs, f32 accumulation)."""
    w1, b1, w2, b2, w3, b3 = params
    xb = x.astype(jnp.bfloat16).astype(jnp.float32)
    h1 = jnp.maximum(xb @ w1.astype(jnp.float32) + b1, 0.0)
    h1 = h1.astype(jnp.bfloat16).astype(jnp.float32)
    h2 = jnp.maximum(h1 @ w2.astype(jnp.float32) + b2, 0.0)
    h2 = h2.astype(jnp.bfloat16).astype(jnp.float32)
    out = h2 @ w3.astype(jnp.float32) + b3
    return out[:, :board_dim]


if __name__ == "__main__":
    board_size = 8                       # board_dim = 64
    batch = 2
    board_dim = board_size * board_size

    key = jax.random.PRNGKey(0)
    k_x, k_p = jax.random.split(key)
    x = jax.random.normal(k_x, (batch, board_dim), jnp.float32)
    params = init_params(board_size, k_p)

    out = hex_policy_forward(x, params)
    out = jax.block_until_ready(out)

    ref = reference_forward(x, params, board_dim)
    assert out.shape == (batch, board_dim)
    assert jnp.allclose(out, ref, atol=1e-3, rtol=1e-3), float(
        jnp.max(jnp.abs(out - ref)))

    print("KERNEL_OK")
</pallas_src>

<mosaic_0001>
module attributes {stable_mosaic.version = 11 : i64} {
  func.func @hex_policy_kernel(%arg0: i32, %arg1: memref<8x64xf32, #tpu.memory_space<vmem>>, %arg2: memref<64x256xbf16, #tpu.memory_space<vmem>>, %arg3: memref<1x256xf32, #tpu.memory_space<vmem>>, %arg4: memref<256x256xbf16, #tpu.memory_space<vmem>>, %arg5: memref<1x256xf32, #tpu.memory_space<vmem>>, %arg6: memref<256x128xbf16, #tpu.memory_space<vmem>>, %arg7: memref<1x128xf32, #tpu.memory_space<vmem>>, %arg8: memref<8x128xf32, #tpu.memory_space<vmem>>) attributes {dimension_semantics = [#tpu.dimension_semantics<parallel>], iteration_bounds = array<i64: 1>, scalar_prefetch = 0 : i64, scratch_operands = 0 : i64, tpu.core_type = #tpu.core_type<tc>, window_params = [{transform_indices = @transform_0, window_bounds = array<i64: 8, 64>}, {pipeline_mode = #tpu.pipeline_mode<synchronous>, transform_indices = @transform_1, window_bounds = array<i64: 64, 256>}, {pipeline_mode = #tpu.pipeline_mode<synchronous>, transform_indices = @transform_2, window_bounds = array<i64: 1, 256>}, {pipeline_mode = #tpu.pipeline_mode<synchronous>, transform_indices = @transform_3, window_bounds = array<i64: 256, 256>}, {pipeline_mode = #tpu.pipeline_mode<synchronous>, transform_indices = @transform_4, window_bounds = array<i64: 1, 256>}, {pipeline_mode = #tpu.pipeline_mode<synchronous>, transform_indices = @transform_5, window_bounds = array<i64: 256, 128>}, {pipeline_mode = #tpu.pipeline_mode<synchronous>, transform_indices = @transform_6, window_bounds = array<i64: 1, 128>}, {transform_indices = @transform_7, window_bounds = array<i64: 8, 128>}]} {
    %c0_i32 = arith.constant 0 : i32
    %c8_i32 = arith.constant 8 : i32
    %0 = arith.muli %c0_i32, %c8_i32 : i32
    %1 = tpu.assume_multiple %0, 8 : i32
    %2 = arith.index_cast %1 : i32 to index
    %c0 = arith.constant 0 : index
    %3 = vector.load %arg1[%2, %c0] : memref<8x64xf32, #tpu.memory_space<vmem>>, vector<8x64xf32>
    %4 = arith.truncf %3 : vector<8x64xf32> to vector<8x64xbf16>
    %c0_0 = arith.constant 0 : index
    %c0_1 = arith.constant 0 : index
    %5 = vector.load %arg2[%c0_0, %c0_1] : memref<64x256xbf16, #tpu.memory_space<vmem>>, vector<64x256xbf16>
    %cst = arith.constant dense<0.000000e+00> : vector<8x256xf32>
    %6 = tpu.matmul %4, %5, %cst {dimension_numbers = #tpu.dot_dimension_numbers<[1], [0], [0], [1], [0, 0, 1, 1], [], []>} : vector<8x64xbf16>, vector<64x256xbf16>, vector<8x256xf32> -> vector<8x256xf32>
    %c0_2 = arith.constant 0 : index
    %c0_3 = arith.constant 0 : index
    %7 = vector.load %arg3[%c0_2, %c0_3] : memref<1x256xf32, #tpu.memory_space<vmem>>, vector<1x256xf32>
    %8 = vector.broadcast %7 : vector<1x256xf32> to vector<8x256xf32>
    %9 = arith.addf %6, %8 : vector<8x256xf32>
    %cst_4 = arith.constant 0.000000e+00 : f32
    %10 = vector.broadcast %cst_4 : f32 to vector<8x256xf32>
    %11 = arith.maximumf %9, %10 : vector<8x256xf32>
    %12 = arith.truncf %11 : vector<8x256xf32> to vector<8x256xbf16>
    %c0_5 = arith.constant 0 : index
    %c0_6 = arith.constant 0 : index
    %13 = vector.load %arg4[%c0_5, %c0_6] : memref<256x256xbf16, #tpu.memory_space<vmem>>, vector<256x256xbf16>
    %cst_7 = arith.constant dense<0.000000e+00> : vector<8x256xf32>
    %14 = tpu.matmul %12, %13, %cst_7 {dimension_numbers = #tpu.dot_dimension_numbers<[1], [0], [0], [1], [0, 0, 1, 1], [], []>} : vector<8x256xbf16>, vector<256x256xbf16>, vector<8x256xf32> -> vector<8x256xf32>
    %c0_8 = arith.constant 0 : index
    %c0_9 = arith.constant 0 : index
    %15 = vector.load %arg5[%c0_8, %c0_9] : memref<1x256xf32, #tpu.memory_space<vmem>>, vector<1x256xf32>
    %16 = vector.broadcast %15 : vector<1x256xf32> to vector<8x256xf32>
    %17 = arith.addf %14, %16 : vector<8x256xf32>
    %cst_10 = arith.constant 0.000000e+00 : f32
    %18 = vector.broadcast %cst_10 : f32 to vector<8x256xf32>
    %19 = arith.maximumf %17, %18 : vector<8x256xf32>
    %20 = arith.truncf %19 : vector<8x256xf32> to vector<8x256xbf16>
    %c0_11 = arith.constant 0 : index
    %c0_12 = arith.constant 0 : index
    %21 = vector.load %arg6[%c0_11, %c0_12] : memref<256x128xbf16, #tpu.memory_space<vmem>>, vector<256x128xbf16>
    %cst_13 = arith.constant dense<0.000000e+00> : vector<8x128xf32>
    %22 = tpu.matmul %20, %21, %cst_13 {dimension_numbers = #tpu.dot_dimension_numbers<[1], [0], [0], [1], [0, 0, 1, 1], [], []>} : vector<8x256xbf16>, vector<256x128xbf16>, vector<8x128xf32> -> vector<8x128xf32>
    %c0_14 = arith.constant 0 : index
    %c0_15 = arith.constant 0 : index
    %23 = vector.load %arg7[%c0_14, %c0_15] : memref<1x128xf32, #tpu.memory_space<vmem>>, vector<1x128xf32>
    %24 = vector.broadcast %23 : vector<1x128xf32> to vector<8x128xf32>
    %25 = arith.addf %22, %24 : vector<8x128xf32>
    %26 = arith.index_cast %1 : i32 to index
    %c0_16 = arith.constant 0 : index
    %27 = vector.load %arg8[%26, %c0_16] : memref<8x128xf32, #tpu.memory_space<vmem>>, vector<8x128xf32>
    tpu.vector_store %arg8[%26, %c0_16], %25 {strides = array<i32>} : memref<8x128xf32, #tpu.memory_space<vmem>>, vector<8x128xf32>,
    %c1_i32 = arith.constant 1 : i32
    return
  }
  func.func @transform_0(%arg0: i32) -> (i32, i32) {
    %c0_i32 = arith.constant 0 : i32
    %c0_i32_0 = arith.constant 0 : i32
    return %arg0, %c0_i32 : i32, i32
  }
  func.func @transform_1(%arg0: i32) -> (i32, i32) {
    %c0_i32 = arith.constant 0 : i32
    %c0_i32_0 = arith.constant 0 : i32
    %c0_i32_1 = arith.constant 0 : i32
    return %c0_i32, %c0_i32_0 : i32, i32
  }
  func.func @transform_2(%arg0: i32) -> (i32, i32) {
    %c0_i32 = arith.constant 0 : i32
    %c0_i32_0 = arith.constant 0 : i32
    %c0_i32_1 = arith.constant 0 : i32
    return %c0_i32, %c0_i32_0 : i32, i32
  }
  func.func @transform_3(%arg0: i32) -> (i32, i32) {
    %c0_i32 = arith.constant 0 : i32
    %c0_i32_0 = arith.constant 0 : i32
    %c0_i32_1 = arith.constant 0 : i32
    return %c0_i32, %c0_i32_0 : i32, i32
  }
  func.func @transform_4(%arg0: i32) -> (i32, i32) {
    %c0_i32 = arith.constant 0 : i32
    %c0_i32_0 = arith.constant 0 : i32
    %c0_i32_1 = arith.constant 0 : i32
    return %c0_i32, %c0_i32_0 : i32, i32
  }
  func.func @transform_5(%arg0: i32) -> (i32, i32) {
    %c0_i32 = arith.constant 0 : i32
    %c0_i32_0 = arith.constant 0 : i32
    %c0_i32_1 = arith.constant 0 : i32
    return %c0_i32, %c0_i32_0 : i32, i32
  }
  func.func @transform_6(%arg0: i32) -> (i32, i32) {
    %c0_i32 = arith.constant 0 : i32
    %c0_i32_0 = arith.constant 0 : i32
    %c0_i32_1 = arith.constant 0 : i32
    return %c0_i32, %c0_i32_0 : i32, i32
  }
  func.func @transform_7(%arg0: i32) -> (i32, i32) {
    %c0_i32 = arith.constant 0 : i32
    %c0_i32_0 = arith.constant 0 : i32
    return %arg0, %c0_i32 : i32, i32
  }
}

</mosaic_0001>

<bundles_post_ra>
// kernel: hex_policy_forward.1
= control target key start
LH: loop header
LB: loop body
LE: loop exit
PB: predicated region body
PF: predicated region fallthrough
CT: control target
= control target key end

     0   :  { %12 = vsyncpa [#allocation3], 0  ;;  %s950_s0 = inlined_call_operand.vmem [shape: f32[8,64], index: 0, kind: input, shape index: {}]   ;;  %s951_s1 = inlined_call_operand.hbm [shape: bf16[64,256], index: 1, kind: input, shape index: {}]   ;;  %s952_s2 = inlined_call_operand.vmem [shape: f32[1,256], index: 2, kind: input, shape index: {}]   ;;  %s953_s3 = inlined_call_operand.hbm [shape: bf16[256,256], index: 3, kind: input, shape index: {}]   ;;  %s954_s4 = inlined_call_operand.vmem [shape: f32[1,256], index: 4, kind: input, shape index: {}]   ;;  %s955_s5 = inlined_call_operand.hbm [shape: bf16[256,128], index: 5, kind: input, shape index: {}]   ;;  %s956_s6 = inlined_call_operand.vmem [shape: f32[1,128], index: 6, kind: input, shape index: {}]   ;;  %s957_s7 = inlined_call_operand.vmem [shape: f32[8,128], index: 7, kind: output, shape index: {}]  }
   0x1   :  { %13 = vsyncpa [#allocation5], 0  ;;  %s844_s24 = smov [#allocation4]   ;;  %s845_s26 = smov [#allocation2]  }
   0x2   :  { %s35_s25 = sshll.u32 %s844_s24, 4  ;;  %s21_s27 = sshll.u32 %s845_s26, 4  ;;  %s36_s25 = int_to_ptr.vmem [resolvable:$true] %s35_s25  ;;  %s892_s27 = int_to_ptr.vmem [resolvable:$true] %s21_s27 }
   0x3   :  { %s774_s30 = scalar_lea.hbm %s953_s3, 4096 }
   0x4   :  { %p775_p0 = scmp.ne.s32.totalorder %s953_s3, %s774_s30  ;;  %p778_p1 = scmp.lt.u32.totalorder %s774_s30, %s953_s3 }
   0x6   :  { %p780_p2 = pnand %p778_p1, %p775_p0 }
   0x8   :  { %783 = shalt.err (!%p780_p2)
}
   0x9   :  { %s784_s12 = scalar_lea.vmem %s36_s25, 4096  ;;  %p789_p4 = scmp.lt.s32.totalorder %s36_s25, %s36_s25 }
   0xa   :  { %p785_p3 = scmp.ne.s32.totalorder %s36_s25, %s784_s12  ;;  %p790_p5 = scmp.lt.s32.totalorder %s784_s12, %s784_s12 }
   0xc   :  { %p791_p6 = por %p790_p5, %p789_p4 }
   0xe   :  { %p792_p7 = pnand %p791_p6, %p785_p3 }
  0x10   :  { %795 = shalt.err (!%p792_p7)
}
  0x11   :  { %s846_s13 = smov 128   ;;  %s847_s14 = smov 8  }
  0x12   :  { %41 = dma.hbm_to_vmem [thread:$0]  %s953_s3, 4096, %s36_s25, [#allocation5], %s846_s13, %s846_s13, %s847_s14  }
  0x13   :  { %s796_s19 = scalar_lea.hbm %s951_s1, 1024 }
  0x14   :  { %p797_p8 = scmp.ne.s32.totalorder %s951_s1, %s796_s19  ;;  %p800_p9 = scmp.lt.u32.totalorder %s796_s19, %s951_s1 }
  0x16   :  { %p802_p10 = pnand %p800_p9, %p797_p8 }
  0x18   :  { %805 = shalt.err (!%p802_p10)
}
  0x19   :  { %s806_s24 = scalar_lea.vmem %s892_s27, 1024  ;;  %p811_p12 = scmp.lt.s32.totalorder %s892_s27, %s892_s27 }
  0x1a   :  { %p807_p11 = scmp.ne.s32.totalorder %s892_s27, %s806_s24  ;;  %p812_p13 = scmp.lt.s32.totalorder %s806_s24, %s806_s24 }
  0x1c   :  { %p813_p0 = por %p812_p13, %p811_p12 }
  0x1e   :  { %p814_p1 = pnand %p813_p0, %p807_p11 }
  0x20   :  { %817 = shalt.err (!%p814_p1)
}
  0x21   :  { %27 = dma.hbm_to_vmem [thread:$0]  %s951_s1, 1024, %s892_s27, [#allocation3], %s846_s13, %s846_s13, %s847_s14  }
  0x22   :  { %s848_s26 = smov [#allocation6]   ;;  %s818_s8 = scalar_lea.hbm %s955_s5, 2048 }
  0x23   :  { %s49_s28 = sshll.u32 %s848_s26, 4  ;;  %p819_p2 = scmp.ne.s32.totalorder %s955_s5, %s818_s8  ;;  %s50_s28 = int_to_ptr.vmem [resolvable:$true] %s49_s28 }
  0x24   :  { %p822_p3 = scmp.lt.u32.totalorder %s818_s8, %s955_s5 }
  0x26   :  { %p824_p4 = pnand %p822_p3, %p819_p2 }
  0x28   :  { %827 = shalt.err (!%p824_p4)
}
  0x29   :  { %s828_s15 = scalar_lea.vmem %s50_s28, 2048  ;;  %p833_p6 = scmp.lt.s32.totalorder %s50_s28, %s50_s28 }
  0x2a   :  { %p829_p5 = scmp.ne.s32.totalorder %s50_s28, %s828_s15  ;;  %p834_p7 = scmp.lt.s32.totalorder %s828_s15, %s828_s15 }
  0x2c   :  { %p835_p8 = por %p834_p7, %p833_p6 }
  0x2e   :  { %p836_p9 = pnand %p835_p8, %p829_p5 }
  0x30   :  { %839 = shalt.err (!%p836_p9)
}
  0x31   :  { %s849_s1 = smov 64   ;;  %s850_s27 = smov 4  }
  0x32   :  { %55 = dma.hbm_to_vmem [thread:$0]  %s955_s5, 2048, %s50_s28, [#allocation5], %s849_s1, %s849_s1, %s850_s27  }
  0x33   :  { %840 = dma.done.wait [#allocation3], 1024  }
  0x34   :  { %841 = vsyncadd [#allocation3], 4294966272 }
  0x35   :  { %842 = dma.done.wait [#allocation5], 6144  }
  0x36   :  { %843 = vsyncadd [#allocation5], 4294961152  ;;  %v851_v0 = vmov 0   ;;  %v698_v1 = vld [vmem:[#allocation2 + $0x4] ss:$8 sps:$4 sm:$0xff]   ;;  %vm130_vm0 = vcmask 523264   ;;  %v80_v55 = vlaneseq }
  0x37   :  { %166 = vmatprep.mubr.bf16.mxu0 %v851_v0  ;;  %v700_v2 = vld [vmem:[#allocation2] ss:$8 sps:$4 sm:$0xff]   ;;  %134 = vmatprep.subr.bf16.mxu0 %v698_v1  ;;  %v701_v3 = vld [vmem:[#allocation2 + $0x14] ss:$8 sps:$4 sm:$0xff]   ;;  %v703_v4 = vld [vmem:[#allocation2 + $0x10] ss:$8 sps:$4 sm:$0xff]  }
  0x38   :  { %135 = vmatpush1.bf16.msra.mxu0 %v700_v2  ;;  %v704_v5 = vld [vmem:[#allocation2 + $0x24] ss:$8 sps:$4 sm:$0xff]   ;;  %v706_v6 = vld [vmem:[#allocation2 + $0x20] ss:$8 sps:$4 sm:$0xff]   ;;  %v713_v9 = vld [vmem:[#allocation4 + $0x14] ss:$8 sps:$4 sm:$0xff]  }
  0x39   :  { %136 = vmatprep.subr.bf16.mxu0 %v701_v3  ;;  %v710_v7 = vld [vmem:[#allocation4 + $0x4] ss:$8 sps:$4 sm:$0xff]   ;;  %v712_v8 = vld [vmem:[#allocation4] ss:$8 sps:$4 sm:$0xff]   ;;  %v707_v10 = vld [vmem:[#allocation2 + $0x34] ss:$8 sps:$4 sm:$0xff]  }
  0x3a   :  { %383 = vmatprep.subr.bf16.mxu1 %v710_v7  ;;  %v715_v11 = vld [vmem:[#allocation4 + $0x10] ss:$8 sps:$4 sm:$0xff]   ;;  %v716_v13 = vld [vmem:[#allocation4 + $0x24] ss:$8 sps:$4 sm:$0xff]   ;;  %v718_v15 = vld [vmem:[#allocation4 + $0x20] ss:$8 sps:$4 sm:$0xff]  }
  0x3b   :  { %384 = vmatpush1.bf16.msra.mxu1 %v712_v8  ;;  %v709_v12 = vld [vmem:[#allocation2 + $0x30] ss:$8 sps:$4 sm:$0xff]   ;;  %v68_v14 = vld [vmem:[%s950_s0] sm:$0xff]  ;;  %v719_v17 = vld [vmem:[#allocation4 + $0x34] ss:$8 sps:$4 sm:$0xff]   ;;  %v81_v56 = vshrl.u32 %v80_v55, 7 }
  0x3c   :  { %137 = vmatpush1.bf16.msra.mxu0 %v703_v4  ;;  %385 = vmatprep.subr.bf16.mxu1 %v713_v9  ;;  %v69_v16 = vpack.c.bf16 %v68_v14, %v68_v14  ;;  %v721_v18 = vld [vmem:[#allocation4 + $0x30] ss:$8 sps:$4 sm:$0xff]   ;;  %v722_v19 = vld [vmem:[#allocation4 + $0x44] ss:$8 sps:$4 sm:$0xff]   ;;  %v724_v20 = vld [vmem:[#allocation4 + $0x40] ss:$8 sps:$4 sm:$0xff]  }
  0x3d   :  { %138 = vmatprep.subr.bf16.mxu0 %v704_v5  ;;  %v725_v21 = vld [vmem:[#allocation4 + $0x54] ss:$8 sps:$4 sm:$0xff]   ;;  %v727_v22 = vld [vmem:[#allocation4 + $0x50] ss:$8 sps:$4 sm:$0xff]   ;;  %v728_v23 = vld [vmem:[#allocation4 + $0x64] ss:$8 sps:$4 sm:$0xff]  }
  0x3e   :  { %v730_v24 = vld [vmem:[#allocation4 + $0x60] ss:$8 sps:$4 sm:$0xff]   ;;  %v731_v25 = vld [vmem:[#allocation4 + $0x74] ss:$8 sps:$4 sm:$0xff]   ;;  %v733_v26 = vld [vmem:[#allocation4 + $0x70] ss:$8 sps:$4 sm:$0xff]  }
  0x3f   :  { %386 = vmatpush1.bf16.msra.mxu1 %v715_v11  ;;  %v734_v27 = vld [vmem:[#allocation4 + $0x84] ss:$8 sps:$4 sm:$0xff]   ;;  %v736_v28 = vld [vmem:[#allocation4 + $0x80] ss:$8 sps:$4 sm:$0xff]   ;;  %v737_v29 = vld [vmem:[#allocation4 + $0x94] ss:$8 sps:$4 sm:$0xff]  }
  0x40   :  { %139 = vmatpush1.bf16.msra.mxu0 %v706_v6  ;;  %387 = vmatprep.subr.bf16.mxu1 %v716_v13  ;;  %v739_v30 = vld [vmem:[#allocation4 + $0x90] ss:$8 sps:$4 sm:$0xff]   ;;  %v740_v31 = vld [vmem:[#allocation4 + $0xa4] ss:$8 sps:$4 sm:$0xff]   ;;  %v742_v32 = vld [vmem:[#allocation4 + $0xa0] ss:$8 sps:$4 sm:$0xff]  }
  0x41   :  { %140 = vmatprep.subr.bf16.mxu0 %v707_v10  ;;  %v743_v33 = vld [vmem:[#allocation4 + $0xb4] ss:$8 sps:$4 sm:$0xff]   ;;  %v745_v34 = vld [vmem:[#allocation4 + $0xb0] ss:$8 sps:$4 sm:$0xff]   ;;  %v746_v35 = vld [vmem:[#allocation4 + $0xc4] ss:$8 sps:$4 sm:$0xff]  }
  0x42   :  { %v748_v36 = vld [vmem:[#allocation4 + $0xc0] ss:$8 sps:$4 sm:$0xff]   ;;  %v749_v37 = vld [vmem:[#allocation4 + $0xd4] ss:$8 sps:$4 sm:$0xff]   ;;  %v751_v38 = vld [vmem:[#allocation4 + $0xd0] ss:$8 sps:$4 sm:$0xff]  }
  0x43   :  { %388 = vmatpush1.bf16.msra.mxu1 %v718_v15  ;;  %v752_v39 = vld [vmem:[#allocation4 + $0xe4] ss:$8 sps:$4 sm:$0xff]   ;;  %v754_v40 = vld [vmem:[#allocation4 + $0xe0] ss:$8 sps:$4 sm:$0xff]   ;;  %v755_v41 = vld [vmem:[#allocation4 + $0xf4] ss:$8 sps:$4 sm:$0xff]  }
  0x44   :  { %141 = vmatpush1.bf16.msra.mxu0 %v709_v12  ;;  %389 = vmatprep.subr.bf16.mxu1 %v719_v17  ;;  %v757_v42 = vld [vmem:[#allocation4 + $0xf0] ss:$8 sps:$4 sm:$0xff]   ;;  %v758_v43 = vld [vmem:[#allocation6 + $0x40] sm:$0xff]   ;;  %v760_v45 = vld [vmem:[#allocation6 + $0x48] sm:$0xff]   ;;  %v82_v57 = vsub.s32 0, %v81_v56  ;;  %v86_v59 = vsub.s32 1, %v81_v56 }
  0x45   :  { %v759_v44 = vld [vmem:[#allocation6] sm:$0xff]   ;;  %668 = vmatprep.subr.bf16.mxu0 %v758_v43  ;;  %v761_v46 = vld [vmem:[#allocation6 + $0x8] sm:$0xff]   ;;  %v762_v47 = vld [vmem:[#allocation6 + $0x50] sm:$0xff]  }
  0x46   :  { %v763_v48 = vld [vmem:[#allocation6 + $0x10] sm:$0xff]   ;;  %v764_v49 = vld [vmem:[#allocation6 + $0x58] sm:$0xff]   ;;  %v766_v51 = vld [vmem:[#allocation6 + $0x60] sm:$0xff]  }
  0x47   :  { %618 = vmatmul.mubr.msk.bf16.vlgmr.msra.gmra.mrb[0].mxu0 %vm130_vm0, %v69_v16  ;;  %390 = vmatpush1.bf16.msra.mxu1 %v721_v18  ;;  %v765_v50 = vld [vmem:[#allocation6 + $0x18] sm:$0xff]   ;;  %v767_v52 = vld [vmem:[#allocation6 + $0x20] sm:$0xff]   ;;  %v768_v53 = vld [vmem:[#allocation6 + $0x68] sm:$0xff]  }
  0x48   :  { %391 = vmatprep.subr.bf16.mxu1 %v722_v19  ;;  %669 = vmatpush3.bf16.msra.mxu0 %v759_v44  ;;  %v769_v54 = vld [vmem:[#allocation6 + $0x28] sm:$0xff]   ;;  %v78_v58 = vld [vmem:[%s952_s2] sm:$0x3]  ;;  %v770_v8 = vld [vmem:[#allocation6 + $0x70] sm:$0xff]  }
  0x49   :  { %670 = vmatprep.subr.bf16.mxu0 %v760_v45  ;;  %v83_v60 = vrot.slane %v78_v58, %v82_v57  ;;  %v87_v61 = vrot.slane %v78_v58, %v86_v59  ;;  %v771_v9 = vld [vmem:[#allocation6 + $0x30] sm:$0xff]   ;;  %v772_v10 = vld [vmem:[#allocation6 + $0x78] sm:$0xff]   ;;  %v211_v12 = vld [vmem:[%s954_s4] sm:$0x3] }
  0x4a   :  { %v773_v11 = vld [vmem:[#allocation6 + $0x38] sm:$0xff]   ;;  %v216_v13 = vrot.slane %v211_v12, %v82_v57  ;;  %v220_v14 = vrot.slane %v211_v12, %v86_v59 }
  0x4b   :  { %392 = vmatpush1.bf16.msra.mxu1 %v724_v20 }
  0x4c   :  { %393 = vmatprep.subr.bf16.mxu1 %v725_v21  ;;  %671 = vmatpush3.bf16.msra.mxu0 %v761_v46 }
  0x4d   :  { %672 = vmatprep.subr.bf16.mxu0 %v762_v47 }
  0x4f   :  { %394 = vmatpush1.bf16.msra.mxu1 %v727_v22 }
  0x50   :  { %395 = vmatprep.subr.bf16.mxu1 %v728_v23  ;;  %673 = vmatpush3.bf16.msra.mxu0 %v763_v48 }
  0x51   :  { %674 = vmatprep.subr.bf16.mxu0 %v764_v49 }
  0x53   :  { %396 = vmatpush1.bf16.msra.mxu1 %v730_v24 }
  0x54   :  { %397 = vmatprep.subr.bf16.mxu1 %v731_v25  ;;  %675 = vmatpush3.bf16.msra.mxu0 %v765_v50 }
  0x55   :  { %676 = vmatprep.subr.bf16.mxu0 %v766_v51 }
  0x57   :  { %398 = vmatpush1.bf16.msra.mxu1 %v733_v26  ;;  %v651_v26 = vld [vmem:[%s956_s6] ss:$0 sm:$0xff] }
  0x58   :  { %399 = vmatprep.subr.bf16.mxu1 %v734_v27  ;;  %677 = vmatpush3.bf16.msra.mxu0 %v767_v52 }
  0x59   :  { %678 = vmatprep.subr.bf16.mxu0 %v768_v53 }
  0x5b   :  { %400 = vmatpush1.bf16.msra.mxu1 %v736_v28 }
  0x5c   :  { %401 = vmatprep.subr.bf16.mxu1 %v737_v29  ;;  %679 = vmatpush3.bf16.msra.mxu0 %v769_v54 }
  0x5d   :  { %680 = vmatprep.subr.bf16.mxu0 %v770_v8 }
  0x5f   :  { %402 = vmatpush1.bf16.msra.mxu1 %v739_v30 }
  0x60   :  { %403 = vmatprep.subr.bf16.mxu1 %v740_v31  ;;  %681 = vmatpush3.bf16.msra.mxu0 %v771_v9 }
  0x61   :  { %682 = vmatprep.subr.bf16.mxu0 %v772_v10 }
  0x63   :  { %404 = vmatpush1.bf16.msra.mxu1 %v742_v32 }
  0x64   :  { %405 = vmatprep.subr.bf16.mxu1 %v743_v33  ;;  %683 = vmatpush3.bf16.msra.mxu0 %v773_v11 }
  0x67   :  { %406 = vmatpush1.bf16.msra.mxu1 %v745_v34 }
  0x68   :  { %407 = vmatprep.subr.bf16.mxu1 %v746_v35 }
  0x6b   :  { %408 = vmatpush1.bf16.msra.mxu1 %v748_v36 }
  0x6c   :  { %409 = vmatprep.subr.bf16.mxu1 %v749_v37 }
  0x6f   :  { %410 = vmatpush1.bf16.msra.mxu1 %v751_v38 }
  0x70   :  { %411 = vmatprep.subr.bf16.mxu1 %v752_v39 }
  0x73   :  { %412 = vmatpush1.bf16.msra.mxu1 %v754_v40 }
  0x74   :  { %413 = vmatprep.subr.bf16.mxu1 %v755_v41 }
  0x77   :  { %414 = vmatpush1.bf16.msra.mxu1 %v757_v42 }
 0x11a   :  { %v168_v62 = vpop.f32.mrb[0].mxu0 }
 0x11b   :  { %v169_v63 = vadd.f32 %v168_v62, %v83_v60  ;;  %v170_v0 = vpop.f32.mrb[1].mxu0 }
 0x11c   :  { %v171_v1 = vadd.f32 %v170_v0, %v87_v61  ;;  %v172_v2 = vpop.f32.mrb[2].mxu0 }
 0x11d   :  { %v175_v3 = vmax.f32 %v169_v63, 0.0  ;;  %v173_v4 = vpop.f32.mrb[3].mxu0 }
 0x11e   :  { %v176_v5 = vmax.f32 %v171_v1, 0.0 }
 0x11f   :  { %v177_v7 = vpack.c.bf16 %v175_v3, %v175_v3 }
 0x120   :  { %v178_v6 = vpack.c.bf16 %v176_v5, %v176_v5 }
 0x122   :  { %415 = vmatprep.mubr.bf16.mxu1 %v178_v6 }
 0x123   :  { %416 = vmatmul.mubr.bf16.vlgmr.msra.gmra.mrb[0].mxu1 %v177_v7 }
 0x1f6   :  { %v417_v15 = vpop.f32.mrb[0].mxu1 }
 0x1f7   :  { %v418_v16 = vadd.f32 %v417_v15, %v216_v13  ;;  %v419_v17 = vpop.f32.mrb[1].mxu1 }
 0x1f8   :  { %v420_v18 = vadd.f32 %v419_v17, %v220_v14  ;;  %v421_v19 = vpop.f32.mrb[2].mxu1 }
 0x1f9   :  { %v424_v20 = vmax.f32 %v418_v16, 0.0  ;;  %v422_v21 = vpop.f32.mrb[3].mxu1 }
 0x1fa   :  { %v425_v22 = vmax.f32 %v420_v18, 0.0 }
 0x1fb   :  { %v426_v24 = vpack.c.bf16 %v424_v20, %v424_v20 }
 0x1fc   :  { %v427_v23 = vpack.c.bf16 %v425_v22, %v425_v22 }
 0x1fe   :  { %595 = vmatprep.mubr.bf16.mxu0 %v427_v23 }
 0x1ff   :  { %596 = vmatmul.mubr.bf16.vlgmr.msra.gmra.mrb[4].mxu0 %v426_v24 }
 0x2d2   :  { %v684_v25 = vpop.f32.mrb[4].mxu0 }
 0x2d3   :  { %v685_v27 = vpop.f32.mrb[5].mxu0 }
 0x2d4   :  { %v686_v28 = vadd.f32 %v685_v27, %v684_v25  ;;  %v687_v29 = vpop.f32.mrb[6].mxu0 }
 0x2d5   :  { %v688_v30 = vpop.f32.mrb[7].mxu0 }
 0x2d6   :  { %v598_v31 = vadd.f32 %v686_v28, %v651_v26 }
 0x2d8   :  { %603 = vst [vmem:[%s957_s7] sm:$0xff] %v598_v31 }
 0x2d9   :  { %608 = vsyncpa [#allocation3], 1 }
 0x2da   :  { %609 = vsyncpa [#allocation5], 1 }

</bundles_post_ra>
